<compile_context>
chip_gen: v6e
topology: v6e:2x2x1
jax: 0.10.0
libtpu: 0.0.40
codegen_flags: <defaults>
</compile_context>

<pallas_src>
import math
from functools import partial

import jax
import jax.numpy as jnp
from jax.experimental import pallas as pl
from jax.experimental.pallas import tpu as pltpu


# --------------------------------------------------------------------------- #
# Pallas kernel: one full encoder block for a (Bt, S, H) slab of batch rows.
# --------------------------------------------------------------------------- #
def _encoder_block_kernel(
    x_ref, mask_ref,
    wq_ref, wk_ref, wv_ref, wo_ref,
    w1_ref, b1_ref, w2_ref, b2_ref,
    g1_ref, be1_ref, g2_ref, be2_ref,
    out_ref,
    ctx_ref,                                   # VMEM scratch (Bt*S, H) f32
    *, num_heads, head_dim, eps, block_b, seq_len,
):
    H = num_heads * head_dim
    M = block_b * seq_len

    x = x_ref[...].reshape(M, H)               # (M, H) f32
    x_bf = x.astype(jnp.bfloat16)

    # ---- Q/K/V projections (bf16 MXU, f32 accumulate). Wq is pre-scaled by
    #      1/sqrt(head_dim) in prepare_encoder_params, so no per-score scaling.
    q = jnp.dot(x_bf, wq_ref[...], preferred_element_type=jnp.float32)   # (M, H)
    k = jnp.dot(x_bf, wk_ref[...], preferred_element_type=jnp.float32)
    v = jnp.dot(x_bf, wv_ref[...], preferred_element_type=jnp.float32)

    mask = mask_ref[...]                       # (Bt, S, S) additive f32

    # ---- per (batch-row, head) attention; statically unrolled (small counts) -
    for b in range(block_b):
        row0 = b * seq_len
        mb = mask[b]                           # (S, S)
        for h in range(num_heads):
            lo = h * head_dim
            qh = q[row0:row0 + seq_len, lo:lo + head_dim]
            kh = k[row0:row0 + seq_len, lo:lo + head_dim]
            vh = v[row0:row0 + seq_len, lo:lo + head_dim]

            s = jnp.dot(qh.astype(jnp.bfloat16), kh.astype(jnp.bfloat16).T,
                        preferred_element_type=jnp.float32)              # (S, S)
            s = s + mb
            s = s - jnp.max(s, axis=-1, keepdims=True)
            p = jnp.exp(s)                                               # unnormalized
            denom = jnp.sum(p, axis=-1, keepdims=True)                   # (S, 1)

            oh = jnp.dot(p.astype(jnp.bfloat16), vh.astype(jnp.bfloat16),
                         preferred_element_type=jnp.float32)             # (S, hd)
            # deferred softmax normalization on the small (S, hd) tile (EUP recip)
            oh = oh * pl.reciprocal(denom, approx=True)

            ctx_ref[row0:row0 + seq_len, lo:lo + head_dim] = oh

    # ---- single full-K (=H) output projection ----------------------------- #
    attn = jnp.dot(ctx_ref[...].astype(jnp.bfloat16), wo_ref[...],
                   preferred_element_type=jnp.float32)                   # (M, H)

    # Dropout is identity in inference mode.
    # ---- residual + layer_norm1 ((x-mean)/(std+eps)*gamma+beta, matches torch src)
    h1 = x + attn
    m1 = jnp.mean(h1, axis=-1, keepdims=True)
    std1 = jnp.sqrt(jnp.mean((h1 - m1) ** 2, axis=-1, keepdims=True))
    x1 = (h1 - m1) / (std1 + eps) * g1_ref[...] + be1_ref[...]

    # ---- feed-forward: ReLU(x W1 + b1) W2 + b2 (bf16 matmuls, f32 bias/acc) - #
    ff = jnp.dot(x1.astype(jnp.bfloat16), w1_ref[...],
                 preferred_element_type=jnp.float32) + b1_ref[...]
    ff = jnp.maximum(ff, 0.0)
    ff = jnp.dot(ff.astype(jnp.bfloat16), w2_ref[...],
                 preferred_element_type=jnp.float32) + b2_ref[...]

    # ---- residual + layer_norm2 ------------------------------------------- #
    h2 = x1 + ff
    m2 = jnp.mean(h2, axis=-1, keepdims=True)
    std2 = jnp.sqrt(jnp.mean((h2 - m2) ** 2, axis=-1, keepdims=True))
    y = (h2 - m2) / (std2 + eps) * g2_ref[...] + be2_ref[...]

    out_ref[...] = y.reshape(block_b, seq_len, H)


# --------------------------------------------------------------------------- #
# One-time parameter preparation (transposes / casts / scale-fold done ONCE).
# --------------------------------------------------------------------------- #
def prepare_encoder_params(params, *, num_heads):
    """torch-layout params -> kernel layout: (in,out) bf16 weights, (1,dim) f32 vectors,
    1/sqrt(head_dim) folded into Wq."""
    prepared = []
    for p in params:
        H = p["wq"].shape[0]
        I = p["w1"].shape[0]
        hd = H // num_heads
        scale = 1.0 / math.sqrt(float(hd))
        prepared.append({
            "wq": (p["wq"].T * scale).astype(jnp.bfloat16),
            "wk": p["wk"].T.astype(jnp.bfloat16),
            "wv": p["wv"].T.astype(jnp.bfloat16),
            "wo": p["wo"].T.astype(jnp.bfloat16),
            "w1": p["w1"].T.astype(jnp.bfloat16),
            "w2": p["w2"].T.astype(jnp.bfloat16),
            "b1": p["b1"].reshape(1, I).astype(jnp.float32),
            "b2": p["b2"].reshape(1, H).astype(jnp.float32),
            "gamma1": p["gamma1"].reshape(1, H).astype(jnp.float32),
            "beta1": p["beta1"].reshape(1, H).astype(jnp.float32),
            "gamma2": p["gamma2"].reshape(1, H).astype(jnp.float32),
            "beta2": p["beta2"].reshape(1, H).astype(jnp.float32),
        })
    return prepared


def _vmem_budget_bytes(block_b, S, H, I):
    w = (4 * H * H + 2 * H * I) * 2                       # bf16 weights
    small = (2 * I + 10 * H) * 4                          # biases / LN params
    io = (2 * H + S) * block_b * S * 4                    # x + out + mask blocks
    scratch = block_b * S * H * 4
    need = 2 * (w + small + io) + scratch                 # double-buffered pipeline
    return int(min(64 * 1024 * 1024, max(16 * 1024 * 1024, 2 * need)))


# --------------------------------------------------------------------------- #
# Wrappers
# --------------------------------------------------------------------------- #
def encoder_block_forward(x, mask, p, *, num_heads, eps, block_b=None):
    """x: (B, S, H) f32; mask: (B, 1, S, S) additive f32 mask; p: prepared params."""
    B, S, H = x.shape
    I = p["b1"].shape[1]
    head_dim = H // num_heads

    if block_b is None:
        # >=2 grid steps whenever B >= 2 (v7x has 2 TensorCores), while packing as
        # many rows per step as possible to fill MXU sublanes.
        block_b = max(1, B // 2)
        while B % block_b:
            block_b -= 1
    grid = (B // block_b,)

    # (B, 1, S, S) -> (B, S, S)
    if mask.ndim == 4:
        mask3 = mask[:, 0, :S, :S]
    else:
        mask3 = mask
    mask3 = jnp.broadcast_to(mask3, (B, S, S)).astype(jnp.float32)

    kernel = partial(_encoder_block_kernel,
                     num_heads=num_heads, head_dim=head_dim, eps=eps,
                     block_b=block_b, seq_len=S)

    def fixed(shape):
        # grid-invariant (weight) block: always block (0, 0, ...)
        n = len(shape)
        return pl.BlockSpec(shape, lambda b, n=n: (0,) * n)

    return pl.pallas_call(
        kernel,
        out_shape=jax.ShapeDtypeStruct((B, S, H), jnp.float32),
        grid=grid,
        in_specs=[
            pl.BlockSpec((block_b, S, H), lambda b: (b, 0, 0)),          # x block
            pl.BlockSpec((block_b, S, S), lambda b: (b, 0, 0)),          # mask block
            fixed((H, H)), fixed((H, H)), fixed((H, H)), fixed((H, H)),  # Wq Wk Wv Wo
            fixed((H, I)), fixed((1, I)),                                # W1, b1
            fixed((I, H)), fixed((1, H)),                                # W2, b2
            fixed((1, H)), fixed((1, H)), fixed((1, H)), fixed((1, H)),  # g1 be1 g2 be2
        ],
        out_specs=pl.BlockSpec((block_b, S, H), lambda b: (b, 0, 0)),
        scratch_shapes=[pltpu.VMEM((block_b * S, H), jnp.float32)],      # head ctx
        compiler_params=pltpu.CompilerParams(
            dimension_semantics=("parallel",),
            vmem_limit_bytes=_vmem_budget_bytes(block_b, S, H, I)),
    )(x.astype(jnp.float32), mask3,
      p["wq"], p["wk"], p["wv"], p["wo"],
      p["w1"], p["b1"], p["w2"], p["b2"],
      p["gamma1"], p["beta1"], p["gamma2"], p["beta2"])


def encoder_forward(x, mask, prepared_params, *, num_heads, eps, block_b=None):
    """Stack of encoder blocks (one fused pallas_call per layer)."""
    for p in prepared_params:
        x = encoder_block_forward(x, mask, p, num_heads=num_heads, eps=eps,
                                  block_b=block_b)
    return x


def init_encoder_params(key, num_layers, hidden_dim, intermediate_dim):
    """Deterministic synthetic params, stored in torch nn.Linear layout (out, in)."""
    params = []
    for _ in range(num_layers):
        key, *ks = jax.random.split(key, 13)
        s = 0.05
        params.append({
            "wq": jax.random.normal(ks[0], (hidden_dim, hidden_dim), jnp.float32) * s,
            "wk": jax.random.normal(ks[1], (hidden_dim, hidden_dim), jnp.float32) * s,
            "wv": jax.random.normal(ks[2], (hidden_dim, hidden_dim), jnp.float32) * s,
            "wo": jax.random.normal(ks[3], (hidden_dim, hidden_dim), jnp.float32) * s,
            "w1": jax.random.normal(ks[4], (intermediate_dim, hidden_dim), jnp.float32) * s,
            "b1": jax.random.normal(ks[5], (intermediate_dim,), jnp.float32) * s,
            "w2": jax.random.normal(ks[6], (hidden_dim, intermediate_dim), jnp.float32) * s,
            "b2": jax.random.normal(ks[7], (hidden_dim,), jnp.float32) * s,
            "gamma1": 1.0 + 0.1 * jax.random.normal(ks[8], (hidden_dim,), jnp.float32),
            "beta1": 0.1 * jax.random.normal(ks[9], (hidden_dim,), jnp.float32),
            "gamma2": 1.0 + 0.1 * jax.random.normal(ks[10], (hidden_dim,), jnp.float32),
            "beta2": 0.1 * jax.random.normal(ks[11], (hidden_dim,), jnp.float32),
        })
    return params


# --------------------------------------------------------------------------- #
# Pure-JAX f32 reference (mirrors the PyTorch module exactly, inference mode)
# --------------------------------------------------------------------------- #
def _ref_layer_norm(x, gamma, beta, eps):
    mean = jnp.mean(x, axis=-1, keepdims=True)
    std = jnp.sqrt(jnp.mean((x - mean) ** 2, axis=-1, keepdims=True))
    return (x - mean) / (std + eps) * gamma + beta


def _ref_mhsa(x, mask, p, num_heads):
    B, S, H = x.shape
    hd = H // num_heads
    q = x @ p["wq"].T
    k = x @ p["wk"].T
    v = x @ p["wv"].T
    q = q.reshape(B, S, num_heads, hd).transpose(0, 2, 1, 3)
    k = k.reshape(B, S, num_heads, hd).transpose(0, 2, 1, 3)
    v = v.reshape(B, S, num_heads, hd).transpose(0, 2, 1, 3)
    att = q @ jnp.swapaxes(k, -1, -2) / jnp.sqrt(jnp.float32(hd))
    att = att + mask[:, :, :S, :S]
    att = jax.nn.softmax(att, axis=-1)
    o = (att @ v).transpose(0, 2, 1, 3).reshape(B, S, H)
    return o @ p["wo"].T


def _ref_ff(x, p):
    h = jax.nn.relu(x @ p["w1"].T + p["b1"])
    return h @ p["w2"].T + p["b2"]


def _ref_block(x, mask, p, num_heads, eps):
    x = _ref_layer_norm(x + _ref_mhsa(x, mask, p, num_heads), p["gamma1"], p["beta1"], eps)
    x = _ref_layer_norm(x + _ref_ff(x, p), p["gamma2"], p["beta2"], eps)
    return x


# --------------------------------------------------------------------------- #
if __name__ == "__main__":
    # Small config consistent with the module: hidden=32, 4 heads, intermediate=64,
    # 2 layers, batch=2, seq=8.
    HIDDEN, INTER, HEADS, LAYERS, EPS = 32, 64, 4, 2, 1e-6
    B, S = 2, 8

    key = jax.random.PRNGKey(0)
    k_params, k_x = jax.random.split(key)

    params = init_encoder_params(k_params, LAYERS, HIDDEN, INTER)
    prepared = prepare_encoder_params(params, num_heads=HEADS)
    x = jax.random.normal(k_x, (B, S, HIDDEN), jnp.float32)

    # Additive attention mask (B, 1, S, S): mask out the last 2 key positions.
    mask = jnp.zeros((B, 1, S, S), jnp.float32)
    mask = mask.at[:, :, :, S - 2:].set(-1e9)

    out = encoder_forward(x, mask, prepared, num_heads=HEADS, eps=EPS)
    out = jax.block_until_ready(out)

    # Reference (pure f32)
    ref = x
    for p in params:
        ref = _ref_block(ref, mask, p, HEADS, EPS)

    assert out.shape == (B, S, HIDDEN)
    max_err = float(jnp.max(jnp.abs(out - ref)))
    # Kernel matmuls run in bf16 -> allow bf16-sized tolerance vs f32 reference.
    assert max_err < 5e-2, f"max abs err = {max_err}"

    print("KERNEL_OK")
</pallas_src>

<mosaic_0001>
module attributes {stable_mosaic.version = 11 : i64} {
  func.func @_encoder_block_kernel(%arg0: i32, %arg1: memref<1x8x32xf32, #tpu.memory_space<vmem>>, %arg2: memref<1x8x8xf32, #tpu.memory_space<vmem>>, %arg3: memref<32x32xbf16, #tpu.memory_space<vmem>>, %arg4: memref<32x32xbf16, #tpu.memory_space<vmem>>, %arg5: memref<32x32xbf16, #tpu.memory_space<vmem>>, %arg6: memref<32x32xbf16, #tpu.memory_space<vmem>>, %arg7: memref<32x64xbf16, #tpu.memory_space<vmem>>, %arg8: memref<1x64xf32, #tpu.memory_space<vmem>>, %arg9: memref<64x32xbf16, #tpu.memory_space<vmem>>, %arg10: memref<1x32xf32, #tpu.memory_space<vmem>>, %arg11: memref<1x32xf32, #tpu.memory_space<vmem>>, %arg12: memref<1x32xf32, #tpu.memory_space<vmem>>, %arg13: memref<1x32xf32, #tpu.memory_space<vmem>>, %arg14: memref<1x32xf32, #tpu.memory_space<vmem>>, %arg15: memref<1x8x32xf32, #tpu.memory_space<vmem>>, %arg16: memref<8x32xf32, #tpu.memory_space<vmem>>) attributes {dimension_semantics = [#tpu.dimension_semantics<parallel>], iteration_bounds = array<i64: 2>, scalar_prefetch = 0 : i64, scratch_operands = 1 : i64, tpu.core_type = #tpu.core_type<tc>, window_params = [{transform_indices = @transform_0, window_bounds = array<i64: 1, 8, 32>}, {transform_indices = @transform_1, window_bounds = array<i64: 1, 8, 8>}, {pipeline_mode = #tpu.pipeline_mode<synchronous>, transform_indices = @transform_2, window_bounds = array<i64: 32, 32>}, {pipeline_mode = #tpu.pipeline_mode<synchronous>, transform_indices = @transform_3, window_bounds = array<i64: 32, 32>}, {pipeline_mode = #tpu.pipeline_mode<synchronous>, transform_indices = @transform_4, window_bounds = array<i64: 32, 32>}, {pipeline_mode = #tpu.pipeline_mode<synchronous>, transform_indices = @transform_5, window_bounds = array<i64: 32, 32>}, {pipeline_mode = #tpu.pipeline_mode<synchronous>, transform_indices = @transform_6, window_bounds = array<i64: 32, 64>}, {pipeline_mode = #tpu.pipeline_mode<synchronous>, transform_indices = @transform_7, window_bounds = array<i64: 1, 64>}, {pipeline_mode = #tpu.pipeline_mode<synchronous>, transform_indices = @transform_8, window_bounds = array<i64: 64, 32>}, {pipeline_mode = #tpu.pipeline_mode<synchronous>, transform_indices = @transform_9, window_bounds = array<i64: 1, 32>}, {pipeline_mode = #tpu.pipeline_mode<synchronous>, transform_indices = @transform_10, window_bounds = array<i64: 1, 32>}, {pipeline_mode = #tpu.pipeline_mode<synchronous>, transform_indices = @transform_11, window_bounds = array<i64: 1, 32>}, {pipeline_mode = #tpu.pipeline_mode<synchronous>, transform_indices = @transform_12, window_bounds = array<i64: 1, 32>}, {pipeline_mode = #tpu.pipeline_mode<synchronous>, transform_indices = @transform_13, window_bounds = array<i64: 1, 32>}, {transform_indices = @transform_14, window_bounds = array<i64: 1, 8, 32>}]} {
    %c0 = arith.constant 0 : index
    %c0_0 = arith.constant 0 : index
    %c0_1 = arith.constant 0 : index
    %0 = vector.load %arg1[%c0, %c0_0, %c0_1] : memref<1x8x32xf32, #tpu.memory_space<vmem>>, vector<1x8x32xf32>
    %1 = vector.shape_cast %0 : vector<1x8x32xf32> to vector<8x32xf32>
    %2 = arith.truncf %1 : vector<8x32xf32> to vector<8x32xbf16>
    %c0_2 = arith.constant 0 : index
    %c0_3 = arith.constant 0 : index
    %3 = vector.load %arg3[%c0_2, %c0_3] : memref<32x32xbf16, #tpu.memory_space<vmem>>, vector<32x32xbf16>
    %cst = arith.constant dense<0.000000e+00> : vector<8x32xf32>
    %4 = tpu.matmul %2, %3, %cst {dimension_numbers = #tpu.dot_dimension_numbers<[1], [0], [0], [1], [0, 0, 1, 1], [], []>} : vector<8x32xbf16>, vector<32x32xbf16>, vector<8x32xf32> -> vector<8x32xf32>
    %c0_4 = arith.constant 0 : index
    %c0_5 = arith.constant 0 : index
    %5 = vector.load %arg4[%c0_4, %c0_5] : memref<32x32xbf16, #tpu.memory_space<vmem>>, vector<32x32xbf16>
    %cst_6 = arith.constant dense<0.000000e+00> : vector<8x32xf32>
    %6 = tpu.matmul %2, %5, %cst_6 {dimension_numbers = #tpu.dot_dimension_numbers<[1], [0], [0], [1], [0, 0, 1, 1], [], []>} : vector<8x32xbf16>, vector<32x32xbf16>, vector<8x32xf32> -> vector<8x32xf32>
    %c0_7 = arith.constant 0 : index
    %c0_8 = arith.constant 0 : index
    %7 = vector.load %arg5[%c0_7, %c0_8] : memref<32x32xbf16, #tpu.memory_space<vmem>>, vector<32x32xbf16>
    %cst_9 = arith.constant dense<0.000000e+00> : vector<8x32xf32>
    %8 = tpu.matmul %2, %7, %cst_9 {dimension_numbers = #tpu.dot_dimension_numbers<[1], [0], [0], [1], [0, 0, 1, 1], [], []>} : vector<8x32xbf16>, vector<32x32xbf16>, vector<8x32xf32> -> vector<8x32xf32>
    %c0_10 = arith.constant 0 : index
    %c0_11 = arith.constant 0 : index
    %c0_12 = arith.constant 0 : index
    %9 = vector.load %arg2[%c0_10, %c0_11, %c0_12] : memref<1x8x8xf32, #tpu.memory_space<vmem>>, vector<1x8x8xf32>
    %10 = vector.shape_cast %9 : vector<1x8x8xf32> to vector<8x8xf32>
    %11 = vector.extract_strided_slice %4 {offsets = [0, 0], sizes = [8, 8], strides = [1, 1]} : vector<8x32xf32> to vector<8x8xf32>
    %12 = vector.extract_strided_slice %6 {offsets = [0, 0], sizes = [8, 8], strides = [1, 1]} : vector<8x32xf32> to vector<8x8xf32>
    %13 = vector.extract_strided_slice %8 {offsets = [0, 0], sizes = [8, 8], strides = [1, 1]} : vector<8x32xf32> to vector<8x8xf32>
    %14 = arith.truncf %11 : vector<8x8xf32> to vector<8x8xbf16>
    %15 = arith.truncf %12 : vector<8x8xf32> to vector<8x8xbf16>
    %16 = tpu.transpose %15, [1, 0] : vector<8x8xbf16> -> vector<8x8xbf16>
    %cst_13 = arith.constant dense<0.000000e+00> : vector<8x8xf32>
    %17 = tpu.matmul %14, %16, %cst_13 {dimension_numbers = #tpu.dot_dimension_numbers<[1], [0], [0], [1], [0, 0, 1, 1], [], []>} : vector<8x8xbf16>, vector<8x8xbf16>, vector<8x8xf32> -> vector<8x8xf32>
    %18 = arith.addf %17, %10 : vector<8x8xf32>
    %cst_14 = arith.constant dense<0xFF800000> : vector<8xf32>
    %19 = vector.multi_reduction <maximumf>, %18, %cst_14 [1] : vector<8x8xf32> to vector<8xf32>
    %20 = vector.shape_cast %19 : vector<8xf32> to vector<8x1xf32>
    %21 = vector.broadcast %20 : vector<8x1xf32> to vector<8x8xf32>
    %22 = arith.subf %18, %21 : vector<8x8xf32>
    %23 = math.exp %22 : vector<8x8xf32>
    %cst_15 = arith.constant dense<0.000000e+00> : vector<8xf32>
    %24 = vector.multi_reduction <add>, %23, %cst_15 [1] : vector<8x8xf32> to vector<8xf32>
    %25 = vector.shape_cast %24 : vector<8xf32> to vector<8x1xf32>
    %26 = arith.truncf %23 : vector<8x8xf32> to vector<8x8xbf16>
    %27 = arith.truncf %13 : vector<8x8xf32> to vector<8x8xbf16>
    %cst_16 = arith.constant dense<0.000000e+00> : vector<8x8xf32>
    %28 = tpu.matmul %26, %27, %cst_16 {dimension_numbers = #tpu.dot_dimension_numbers<[1], [0], [0], [1], [0, 0, 1, 1], [], []>} : vector<8x8xbf16>, vector<8x8xbf16>, vector<8x8xf32> -> vector<8x8xf32>
    %29 = tpu.reciprocal %25 {approx = true} : vector<8x1xf32> -> vector<8x1xf32>
    %30 = vector.broadcast %29 : vector<8x1xf32> to vector<8x8xf32>
    %31 = arith.mulf %28, %30 : vector<8x8xf32>
    %c0_17 = arith.constant 0 : index
    %c0_18 = arith.constant 0 : index
    %32 = vector.load %arg16[%c0_17, %c0_18] : memref<8x32xf32, #tpu.memory_space<vmem>>, vector<8x8xf32>
    tpu.vector_store %arg16[%c0_17, %c0_18], %31 {strides = array<i32>} : memref<8x32xf32, #tpu.memory_space<vmem>>, vector<8x8xf32>,
    %33 = vector.extract_strided_slice %4 {offsets = [0, 8], sizes = [8, 8], strides = [1, 1]} : vector<8x32xf32> to vector<8x8xf32>
    %34 = vector.extract_strided_slice %6 {offsets = [0, 8], sizes = [8, 8], strides = [1, 1]} : vector<8x32xf32> to vector<8x8xf32>
    %35 = vector.extract_strided_slice %8 {offsets = [0, 8], sizes = [8, 8], strides = [1, 1]} : vector<8x32xf32> to vector<8x8xf32>
    %36 = arith.truncf %33 : vector<8x8xf32> to vector<8x8xbf16>
    %37 = arith.truncf %34 : vector<8x8xf32> to vector<8x8xbf16>
    %38 = tpu.transpose %37, [1, 0] : vector<8x8xbf16> -> vector<8x8xbf16>
    %cst_19 = arith.constant dense<0.000000e+00> : vector<8x8xf32>
    %39 = tpu.matmul %36, %38, %cst_19 {dimension_numbers = #tpu.dot_dimension_numbers<[1], [0], [0], [1], [0, 0, 1, 1], [], []>} : vector<8x8xbf16>, vector<8x8xbf16>, vector<8x8xf32> -> vector<8x8xf32>
    %40 = arith.addf %39, %10 : vector<8x8xf32>
    %cst_20 = arith.constant dense<0xFF800000> : vector<8xf32>
    %41 = vector.multi_reduction <maximumf>, %40, %cst_20 [1] : vector<8x8xf32> to vector<8xf32>
    %42 = vector.shape_cast %41 : vector<8xf32> to vector<8x1xf32>
    %43 = vector.broadcast %42 : vector<8x1xf32> to vector<8x8xf32>
    %44 = arith.subf %40, %43 : vector<8x8xf32>
    %45 = math.exp %44 : vector<8x8xf32>
    %cst_21 = arith.constant dense<0.000000e+00> : vector<8xf32>
    %46 = vector.multi_reduction <add>, %45, %cst_21 [1] : vector<8x8xf32> to vector<8xf32>
    %47 = vector.shape_cast %46 : vector<8xf32> to vector<8x1xf32>
    %48 = arith.truncf %45 : vector<8x8xf32> to vector<8x8xbf16>
    %49 = arith.truncf %35 : vector<8x8xf32> to vector<8x8xbf16>
    %cst_22 = arith.constant dense<0.000000e+00> : vector<8x8xf32>
    %50 = tpu.matmul %48, %49, %cst_22 {dimension_numbers = #tpu.dot_dimension_numbers<[1], [0], [0], [1], [0, 0, 1, 1], [], []>} : vector<8x8xbf16>, vector<8x8xbf16>, vector<8x8xf32> -> vector<8x8xf32>
    %51 = tpu.reciprocal %47 {approx = true} : vector<8x1xf32> -> vector<8x1xf32>
    %52 = vector.broadcast %51 : vector<8x1xf32> to vector<8x8xf32>
    %53 = arith.mulf %50, %52 : vector<8x8xf32>
    %c0_23 = arith.constant 0 : index
    %c8 = arith.constant 8 : index
    %54 = vector.load %arg16[%c0_23, %c8] : memref<8x32xf32, #tpu.memory_space<vmem>>, vector<8x8xf32>
    tpu.vector_store %arg16[%c0_23, %c8], %53 {strides = array<i32>} : memref<8x32xf32, #tpu.memory_space<vmem>>, vector<8x8xf32>,
    %55 = vector.extract_strided_slice %4 {offsets = [0, 16], sizes = [8, 8], strides = [1, 1]} : vector<8x32xf32> to vector<8x8xf32>
    %56 = vector.extract_strided_slice %6 {offsets = [0, 16], sizes = [8, 8], strides = [1, 1]} : vector<8x32xf32> to vector<8x8xf32>
    %57 = vector.extract_strided_slice %8 {offsets = [0, 16], sizes = [8, 8], strides = [1, 1]} : vector<8x32xf32> to vector<8x8xf32>
    %58 = arith.truncf %55 : vector<8x8xf32> to vector<8x8xbf16>
    %59 = arith.truncf %56 : vector<8x8xf32> to vector<8x8xbf16>
    %60 = tpu.transpose %59, [1, 0] : vector<8x8xbf16> -> vector<8x8xbf16>
    %cst_24 = arith.constant dense<0.000000e+00> : vector<8x8xf32>
    %61 = tpu.matmul %58, %60, %cst_24 {dimension_numbers = #tpu.dot_dimension_numbers<[1], [0], [0], [1], [0, 0, 1, 1], [], []>} : vector<8x8xbf16>, vector<8x8xbf16>, vector<8x8xf32> -> vector<8x8xf32>
    %62 = arith.addf %61, %10 : vector<8x8xf32>
    %cst_25 = arith.constant dense<0xFF800000> : vector<8xf32>
    %63 = vector.multi_reduction <maximumf>, %62, %cst_25 [1] : vector<8x8xf32> to vector<8xf32>
    %64 = vector.shape_cast %63 : vector<8xf32> to vector<8x1xf32>
    %65 = vector.broadcast %64 : vector<8x1xf32> to vector<8x8xf32>
    %66 = arith.subf %62, %65 : vector<8x8xf32>
    %67 = math.exp %66 : vector<8x8xf32>
    %cst_26 = arith.constant dense<0.000000e+00> : vector<8xf32>
    %68 = vector.multi_reduction <add>, %67, %cst_26 [1] : vector<8x8xf32> to vector<8xf32>
    %69 = vector.shape_cast %68 : vector<8xf32> to vector<8x1xf32>
    %70 = arith.truncf %67 : vector<8x8xf32> to vector<8x8xbf16>
    %71 = arith.truncf %57 : vector<8x8xf32> to vector<8x8xbf16>
    %cst_27 = arith.constant dense<0.000000e+00> : vector<8x8xf32>
    %72 = tpu.matmul %70, %71, %cst_27 {dimension_numbers = #tpu.dot_dimension_numbers<[1], [0], [0], [1], [0, 0, 1, 1], [], []>} : vector<8x8xbf16>, vector<8x8xbf16>, vector<8x8xf32> -> vector<8x8xf32>
    %73 = tpu.reciprocal %69 {approx = true} : vector<8x1xf32> -> vector<8x1xf32>
    %74 = vector.broadcast %73 : vector<8x1xf32> to vector<8x8xf32>
    %75 = arith.mulf %72, %74 : vector<8x8xf32>
    %c0_28 = arith.constant 0 : index
    %c16 = arith.constant 16 : index
    %76 = vector.load %arg16[%c0_28, %c16] : memref<8x32xf32, #tpu.memory_space<vmem>>, vector<8x8xf32>
    tpu.vector_store %arg16[%c0_28, %c16], %75 {strides = array<i32>} : memref<8x32xf32, #tpu.memory_space<vmem>>, vector<8x8xf32>,
    %77 = vector.extract_strided_slice %4 {offsets = [0, 24], sizes = [8, 8], strides = [1, 1]} : vector<8x32xf32> to vector<8x8xf32>
    %78 = vector.extract_strided_slice %6 {offsets = [0, 24], sizes = [8, 8], strides = [1, 1]} : vector<8x32xf32> to vector<8x8xf32>
    %79 = vector.extract_strided_slice %8 {offsets = [0, 24], sizes = [8, 8], strides = [1, 1]} : vector<8x32xf32> to vector<8x8xf32>
    %80 = arith.truncf %77 : vector<8x8xf32> to vector<8x8xbf16>
    %81 = arith.truncf %78 : vector<8x8xf32> to vector<8x8xbf16>
    %82 = tpu.transpose %81, [1, 0] : vector<8x8xbf16> -> vector<8x8xbf16>
    %cst_29 = arith.constant dense<0.000000e+00> : vector<8x8xf32>
    %83 = tpu.matmul %80, %82, %cst_29 {dimension_numbers = #tpu.dot_dimension_numbers<[1], [0], [0], [1], [0, 0, 1, 1], [], []>} : vector<8x8xbf16>, vector<8x8xbf16>, vector<8x8xf32> -> vector<8x8xf32>
    %84 = arith.addf %83, %10 : vector<8x8xf32>
    %cst_30 = arith.constant dense<0xFF800000> : vector<8xf32>
    %85 = vector.multi_reduction <maximumf>, %84, %cst_30 [1] : vector<8x8xf32> to vector<8xf32>
    %86 = vector.shape_cast %85 : vector<8xf32> to vector<8x1xf32>
    %87 = vector.broadcast %86 : vector<8x1xf32> to vector<8x8xf32>
    %88 = arith.subf %84, %87 : vector<8x8xf32>
    %89 = math.exp %88 : vector<8x8xf32>
    %cst_31 = arith.constant dense<0.000000e+00> : vector<8xf32>
    %90 = vector.multi_reduction <add>, %89, %cst_31 [1] : vector<8x8xf32> to vector<8xf32>
    %91 = vector.shape_cast %90 : vector<8xf32> to vector<8x1xf32>
    %92 = arith.truncf %89 : vector<8x8xf32> to vector<8x8xbf16>
    %93 = arith.truncf %79 : vector<8x8xf32> to vector<8x8xbf16>
    %cst_32 = arith.constant dense<0.000000e+00> : vector<8x8xf32>
    %94 = tpu.matmul %92, %93, %cst_32 {dimension_numbers = #tpu.dot_dimension_numbers<[1], [0], [0], [1], [0, 0, 1, 1], [], []>} : vector<8x8xbf16>, vector<8x8xbf16>, vector<8x8xf32> -> vector<8x8xf32>
    %95 = tpu.reciprocal %91 {approx = true} : vector<8x1xf32> -> vector<8x1xf32>
    %96 = vector.broadcast %95 : vector<8x1xf32> to vector<8x8xf32>
    %97 = arith.mulf %94, %96 : vector<8x8xf32>
    %c0_33 = arith.constant 0 : index
    %c24 = arith.constant 24 : index
    %98 = vector.load %arg16[%c0_33, %c24] : memref<8x32xf32, #tpu.memory_space<vmem>>, vector<8x8xf32>
    tpu.vector_store %arg16[%c0_33, %c24], %97 {strides = array<i32>} : memref<8x32xf32, #tpu.memory_space<vmem>>, vector<8x8xf32>,
    %c0_34 = arith.constant 0 : index
    %c0_35 = arith.constant 0 : index
    %99 = vector.load %arg16[%c0_34, %c0_35] : memref<8x32xf32, #tpu.memory_space<vmem>>, vector<8x32xf32>
    %100 = arith.truncf %99 : vector<8x32xf32> to vector<8x32xbf16>
    %c0_36 = arith.constant 0 : index
    %c0_37 = arith.constant 0 : index
    %101 = vector.load %arg6[%c0_36, %c0_37] : memref<32x32xbf16, #tpu.memory_space<vmem>>, vector<32x32xbf16>
    %cst_38 = arith.constant dense<0.000000e+00> : vector<8x32xf32>
    %102 = tpu.matmul %100, %101, %cst_38 {dimension_numbers = #tpu.dot_dimension_numbers<[1], [0], [0], [1], [0, 0, 1, 1], [], []>} : vector<8x32xbf16>, vector<32x32xbf16>, vector<8x32xf32> -> vector<8x32xf32>
    %103 = arith.addf %1, %102 : vector<8x32xf32>
    %cst_39 = arith.constant dense<0.000000e+00> : vector<8xf32>
    %104 = vector.multi_reduction <add>, %103, %cst_39 [1] : vector<8x32xf32> to vector<8xf32>
    %105 = vector.shape_cast %104 : vector<8xf32> to vector<8x1xf32>
    %cst_40 = arith.constant 3.200000e+01 : f32
    %106 = vector.broadcast %cst_40 : f32 to vector<8x1xf32>
    %107 = arith.divf %105, %106 : vector<8x1xf32>
    %108 = vector.broadcast %107 : vector<8x1xf32> to vector<8x32xf32>
    %109 = arith.subf %103, %108 : vector<8x32xf32>
    %110 = arith.mulf %109, %109 : vector<8x32xf32>
    %cst_41 = arith.constant dense<0.000000e+00> : vector<8xf32>
    %111 = vector.multi_reduction <add>, %110, %cst_41 [1] : vector<8x32xf32> to vector<8xf32>
    %112 = vector.shape_cast %111 : vector<8xf32> to vector<8x1xf32>
    %cst_42 = arith.constant 3.200000e+01 : f32
    %113 = vector.broadcast %cst_42 : f32 to vector<8x1xf32>
    %114 = arith.divf %112, %113 : vector<8x1xf32>
    %115 = math.sqrt %114 : vector<8x1xf32>
    %116 = vector.broadcast %107 : vector<8x1xf32> to vector<8x32xf32>
    %117 = arith.subf %103, %116 : vector<8x32xf32>
    %cst_43 = arith.constant 9.99999997E-7 : f32
    %118 = vector.broadcast %cst_43 : f32 to vector<8x1xf32>
    %119 = arith.addf %115, %118 : vector<8x1xf32>
    %120 = vector.broadcast %119 : vector<8x1xf32> to vector<8x32xf32>
    %121 = arith.divf %117, %120 : vector<8x32xf32>
    %c0_44 = arith.constant 0 : index
    %c0_45 = arith.constant 0 : index
    %122 = vector.load %arg11[%c0_44, %c0_45] : memref<1x32xf32, #tpu.memory_space<vmem>>, vector<1x32xf32>
    %123 = vector.broadcast %122 : vector<1x32xf32> to vector<8x32xf32>
    %124 = arith.mulf %121, %123 : vector<8x32xf32>
    %c0_46 = arith.constant 0 : index
    %c0_47 = arith.constant 0 : index
    %125 = vector.load %arg12[%c0_46, %c0_47] : memref<1x32xf32, #tpu.memory_space<vmem>>, vector<1x32xf32>
    %126 = vector.broadcast %125 : vector<1x32xf32> to vector<8x32xf32>
    %127 = arith.addf %124, %126 : vector<8x32xf32>
    %128 = arith.truncf %127 : vector<8x32xf32> to vector<8x32xbf16>
    %c0_48 = arith.constant 0 : index
    %c0_49 = arith.constant 0 : index
    %129 = vector.load %arg7[%c0_48, %c0_49] : memref<32x64xbf16, #tpu.memory_space<vmem>>, vector<32x64xbf16>
    %cst_50 = arith.constant dense<0.000000e+00> : vector<8x64xf32>
    %130 = tpu.matmul %128, %129, %cst_50 {dimension_numbers = #tpu.dot_dimension_numbers<[1], [0], [0], [1], [0, 0, 1, 1], [], []>} : vector<8x32xbf16>, vector<32x64xbf16>, vector<8x64xf32> -> vector<8x64xf32>
    %c0_51 = arith.constant 0 : index
    %c0_52 = arith.constant 0 : index
    %131 = vector.load %arg8[%c0_51, %c0_52] : memref<1x64xf32, #tpu.memory_space<vmem>>, vector<1x64xf32>
    %132 = vector.broadcast %131 : vector<1x64xf32> to vector<8x64xf32>
    %133 = arith.addf %130, %132 : vector<8x64xf32>
    %cst_53 = arith.constant 0.000000e+00 : f32
    %134 = vector.broadcast %cst_53 : f32 to vector<8x64xf32>
    %135 = arith.maximumf %133, %134 : vector<8x64xf32>
    %136 = arith.truncf %135 : vector<8x64xf32> to vector<8x64xbf16>
    %c0_54 = arith.constant 0 : index
    %c0_55 = arith.constant 0 : index
    %137 = vector.load %arg9[%c0_54, %c0_55] : memref<64x32xbf16, #tpu.memory_space<vmem>>, vector<64x32xbf16>
    %cst_56 = arith.constant dense<0.000000e+00> : vector<8x32xf32>
    %138 = tpu.matmul %136, %137, %cst_56 {dimension_numbers = #tpu.dot_dimension_numbers<[1], [0], [0], [1], [0, 0, 1, 1], [], []>} : vector<8x64xbf16>, vector<64x32xbf16>, vector<8x32xf32> -> vector<8x32xf32>
    %c0_57 = arith.constant 0 : index
    %c0_58 = arith.constant 0 : index
    %139 = vector.load %arg10[%c0_57, %c0_58] : memref<1x32xf32, #tpu.memory_space<vmem>>, vector<1x32xf32>
    %140 = vector.broadcast %139 : vector<1x32xf32> to vector<8x32xf32>
    %141 = arith.addf %138, %140 : vector<8x32xf32>
    %142 = arith.addf %127, %141 : vector<8x32xf32>
    %cst_59 = arith.constant dense<0.000000e+00> : vector<8xf32>
    %143 = vector.multi_reduction <add>, %142, %cst_59 [1] : vector<8x32xf32> to vector<8xf32>
    %144 = vector.shape_cast %143 : vector<8xf32> to vector<8x1xf32>
    %cst_60 = arith.constant 3.200000e+01 : f32
    %145 = vector.broadcast %cst_60 : f32 to vector<8x1xf32>
    %146 = arith.divf %144, %145 : vector<8x1xf32>
    %147 = vector.broadcast %146 : vector<8x1xf32> to vector<8x32xf32>
    %148 = arith.subf %142, %147 : vector<8x32xf32>
    %149 = arith.mulf %148, %148 : vector<8x32xf32>
    %cst_61 = arith.constant dense<0.000000e+00> : vector<8xf32>
    %150 = vector.multi_reduction <add>, %149, %cst_61 [1] : vector<8x32xf32> to vector<8xf32>
    %151 = vector.shape_cast %150 : vector<8xf32> to vector<8x1xf32>
    %cst_62 = arith.constant 3.200000e+01 : f32
    %152 = vector.broadcast %cst_62 : f32 to vector<8x1xf32>
    %153 = arith.divf %151, %152 : vector<8x1xf32>
    %154 = math.sqrt %153 : vector<8x1xf32>
    %155 = vector.broadcast %146 : vector<8x1xf32> to vector<8x32xf32>
    %156 = arith.subf %142, %155 : vector<8x32xf32>
    %cst_63 = arith.constant 9.99999997E-7 : f32
    %157 = vector.broadcast %cst_63 : f32 to vector<8x1xf32>
    %158 = arith.addf %154, %157 : vector<8x1xf32>
    %159 = vector.broadcast %158 : vector<8x1xf32> to vector<8x32xf32>
    %160 = arith.divf %156, %159 : vector<8x32xf32>
    %c0_64 = arith.constant 0 : index
    %c0_65 = arith.constant 0 : index
    %161 = vector.load %arg13[%c0_64, %c0_65] : memref<1x32xf32, #tpu.memory_space<vmem>>, vector<1x32xf32>
    %162 = vector.broadcast %161 : vector<1x32xf32> to vector<8x32xf32>
    %163 = arith.mulf %160, %162 : vector<8x32xf32>
    %c0_66 = arith.constant 0 : index
    %c0_67 = arith.constant 0 : index
    %164 = vector.load %arg14[%c0_66, %c0_67] : memref<1x32xf32, #tpu.memory_space<vmem>>, vector<1x32xf32>
    %165 = vector.broadcast %164 : vector<1x32xf32> to vector<8x32xf32>
    %166 = arith.addf %163, %165 : vector<8x32xf32>
    %167 = vector.shape_cast %166 : vector<8x32xf32> to vector<1x8x32xf32>
    %c0_68 = arith.constant 0 : index
    %c0_69 = arith.constant 0 : index
    %c0_70 = arith.constant 0 : index
    %168 = vector.load %arg15[%c0_68, %c0_69, %c0_70] : memref<1x8x32xf32, #tpu.memory_space<vmem>>, vector<1x8x32xf32>
    tpu.vector_store %arg15[%c0_68, %c0_69, %c0_70], %167 {strides = array<i32>} : memref<1x8x32xf32, #tpu.memory_space<vmem>>, vector<1x8x32xf32>,
    return
  }
  func.func @transform_0(%arg0: i32) -> (i32, i32, i32) {
    %c0_i32 = arith.constant 0 : i32
    %c0_i32_0 = arith.constant 0 : i32
    %c0_i32_1 = arith.constant 0 : i32
    return %arg0, %c0_i32, %c0_i32_0 : i32, i32, i32
  }
  func.func @transform_1(%arg0: i32) -> (i32, i32, i32) {
    %c0_i32 = arith.constant 0 : i32
    %c0_i32_0 = arith.constant 0 : i32
    %c0_i32_1 = arith.constant 0 : i32
    return %arg0, %c0_i32, %c0_i32_0 : i32, i32, i32
  }
  func.func @transform_2(%arg0: i32) -> (i32, i32) {
    %c0_i32 = arith.constant 0 : i32
    %c0_i32_0 = arith.constant 0 : i32
    %c0_i32_1 = arith.constant 0 : i32
    return %c0_i32, %c0_i32_0 : i32, i32
  }
  func.func @transform_3(%arg0: i32) -> (i32, i32) {
    %c0_i32 = arith.constant 0 : i32
    %c0_i32_0 = arith.constant 0 : i32
    %c0_i32_1 = arith.constant 0 : i32
    return %c0_i32, %c0_i32_0 : i32, i32
  }
  func.func @transform_4(%arg0: i32) -> (i32, i32) {
    %c0_i32 = arith.constant 0 : i32
    %c0_i32_0 = arith.constant 0 : i32
    %c0_i32_1 = arith.constant 0 : i32
    return %c0_i32, %c0_i32_0 : i32, i32
  }
  func.func @transform_5(%arg0: i32) -> (i32, i32) {
    %c0_i32 = arith.constant 0 : i32
    %c0_i32_0 = arith.constant 0 : i32
    %c0_i32_1 = arith.constant 0 : i32
    return %c0_i32, %c0_i32_0 : i32, i32
  }
  func.func @transform_6(%arg0: i32) -> (i32, i32) {
    %c0_i32 = arith.constant 0 : i32
    %c0_i32_0 = arith.constant 0 : i32
    %c0_i32_1 = arith.constant 0 : i32
    return %c0_i32, %c0_i32_0 : i32, i32
  }
  func.func @transform_7(%arg0: i32) -> (i32, i32) {
    %c0_i32 = arith.constant 0 : i32
    %c0_i32_0 = arith.constant 0 : i32
    %c0_i32_1 = arith.constant 0 : i32
    return %c0_i32, %c0_i32_0 : i32, i32
  }
  func.func @transform_8(%arg0: i32) -> (i32, i32) {
    %c0_i32 = arith.constant 0 : i32
    %c0_i32_0 = arith.constant 0 : i32
    %c0_i32_1 = arith.constant 0 : i32
    return %c0_i32, %c0_i32_0 : i32, i32
  }
  func.func @transform_9(%arg0: i32) -> (i32, i32) {
    %c0_i32 = arith.constant 0 : i32
    %c0_i32_0 = arith.constant 0 : i32
    %c0_i32_1 = arith.constant 0 : i32
    return %c0_i32, %c0_i32_0 : i32, i32
  }
  func.func @transform_10(%arg0: i32) -> (i32, i32) {
    %c0_i32 = arith.constant 0 : i32
    %c0_i32_0 = arith.constant 0 : i32
    %c0_i32_1 = arith.constant 0 : i32
    return %c0_i32, %c0_i32_0 : i32, i32
  }
  func.func @transform_11(%arg0: i32) -> (i32, i32) {
    %c0_i32 = arith.constant 0 : i32
    %c0_i32_0 = arith.constant 0 : i32
    %c0_i32_1 = arith.constant 0 : i32
    return %c0_i32, %c0_i32_0 : i32, i32
  }
  func.func @transform_12(%arg0: i32) -> (i32, i32) {
    %c0_i32 = arith.constant 0 : i32
    %c0_i32_0 = arith.constant 0 : i32
    %c0_i32_1 = arith.constant 0 : i32
    return %c0_i32, %c0_i32_0 : i32, i32
  }
  func.func @transform_13(%arg0: i32) -> (i32, i32) {
    %c0_i32 = arith.constant 0 : i32
    %c0_i32_0 = arith.constant 0 : i32
    %c0_i32_1 = arith.constant 0 : i32
    return %c0_i32, %c0_i32_0 : i32, i32
  }
  func.func @transform_14(%arg0: i32) -> (i32, i32, i32) {
    %c0_i32 = arith.constant 0 : i32
    %c0_i32_0 = arith.constant 0 : i32
    %c0_i32_1 = arith.constant 0 : i32
    return %arg0, %c0_i32, %c0_i32_0 : i32, i32, i32
  }
}

</mosaic_0001>

<bundles_post_ra>
// kernel: tpu_custom_call.1
= control target key start
LH: loop header
LB: loop body
LE: loop exit
PB: predicated region body
PF: predicated region fallthrough
CT: control target
= control target key end

     0   :  { %s2481_s0 = inlined_call_operand.vmem [shape: f32[2,8,32], index: 0, kind: input, shape index: {}]   ;;  %s2482_s1 = inlined_call_operand.vmem [shape: f32[2,8,8], index: 1, kind: input, shape index: {}]   ;;  %s2483_s2 = inlined_call_operand.vmem [shape: bf16[32,32], index: 2, kind: input, shape index: {}]   ;;  %s2484_s3 = inlined_call_operand.hbm [shape: bf16[32,32], index: 3, kind: input, shape index: {}]   ;;  %s2485_s4 = inlined_call_operand.hbm [shape: bf16[32,32], index: 4, kind: input, shape index: {}]   ;;  %s2486_s5 = inlined_call_operand.hbm [shape: bf16[32,32], index: 5, kind: input, shape index: {}]   ;;  %s2487_s6 = inlined_call_operand.hbm [shape: bf16[32,64], index: 6, kind: input, shape index: {}]   ;;  %s2488_s7 = inlined_call_operand.vmem [shape: f32[1,64], index: 7, kind: input, shape index: {}]   ;;  %s2489_s8 = inlined_call_operand.vmem [shape: bf16[64,32], index: 8, kind: input, shape index: {}]   ;;  %s2490_s9 = inlined_call_operand.vmem [shape: f32[1,32], index: 9, kind: input, shape index: {}]   ;;  %s2491_s10 = inlined_call_operand.vmem [shape: f32[1,32], index: 10, kind: input, shape index: {}]   ;;  %s2492_s11 = inlined_call_operand.vmem [shape: f32[1,32], index: 11, kind: input, shape index: {}]   ;;  %s2493_s12 = inlined_call_operand.vmem [shape: f32[1,32], index: 12, kind: input, shape index: {}]   ;;  %s2494_s13 = inlined_call_operand.vmem [shape: f32[1,32], index: 13, kind: input, shape index: {}]   ;;  %s2495_s14 = inlined_call_operand.hbm [shape: f32[2,8,32], index: 14, kind: output, shape index: {}]  }
   0x1   :  { %2501 = sst [smem:[#allocation21_spill]] %s2481_s0 }
   0x2   :  { %19 = vsyncpa [#allocation4], 0 }
   0x3   :  { %20 = vsyncpa [#allocation7], 0 }
   0x4   :  { %21 = vsyncpa [#allocation10], 0 }
   0x5   :  { %22 = vsyncpa [#allocation5], 0 }
   0x6   :  { %24 = vsyncpa [#allocation5 + $0x1], 0  ;;  %s2176_s29 = smov 0   ;;  %s2178_s30 = smov 0  }
   0x7   :  { %s2180_s15 = smov 0   ;;  %s2182_s16 = smov 0  }
   0x8 LB: > { %2502 = sst [smem:[#allocation16_spill]] %s2072_s29  ;;  %s2197_s17 = sadd.s32 4294967295, %s2084_s16   ;;  %s2084_s16 = sphi %s2182_s16, %s2514_s16   ;;  %s2080_s15 = sphi %s2180_s15, %s2516_s15   ;;  %s2076_s30 = sphi %s2178_s30, %s2518_s30   ;;  %s2072_s29 = sphi %s2176_s29, %s2517_s29  }
   0x9   : > { %2503 = sst [smem:[#allocation17_spill]] %s2080_s15  ;;  %s1591_s18 = sadd.s32 4294967294, %s2084_s16  }
   0xa   : > { %s2201_s19 = sadd.s32 1, %s2084_s16   ;;  %s341_s20 = sadd.s32 1, %s2080_s15 }
   0xb   : > { %2504 = sst [smem:[#allocation18_spill]] %s2201_s19  ;;  %s338_s21 = ssub.s32 %s2084_s16, %s2201_s19 }
   0xc   : > { %p351_p0 = scmp.ne.s32.totalorder %s2080_s15, %s2076_s30  ;;  %p339_p1 = scmp.eq.s32.totalorder %s338_s21, 0 }
   0xd   : > { %p352_p2 = scmp.eq.s32.totalorder %s2197_s17, 1  ;;  %p357_p3 = scmp.ne.s32.totalorder %s2076_s30, %s2072_s29 }
   0xe   : > { %p358_p4 = scmp.eq.s32.totalorder %s1591_s18, 1  ;;  %p1592_p7 = scmp.ge.s32.totalorder %s2084_s16, 1 }
   0xf   : > { %s2212_s22 = scalar_select %p339_p1, %s2080_s15, %s341_s20  }
  0x10   : > { %p2214_p5 = por %p352_p2, %p351_p0  ;;  %p2218_p6 = por %p358_p4, %p357_p3 }
  0x11   : > { %2505 = sst [smem:[#allocation19_spill]] %s2212_s22  ;;  %p365_p8 = scmp.lt.s32.totalorder %s2084_s16, 3 }
  0x12   : > { %s2507_s24 = scalar_select %p2218_p6, 1, 0 }
  0x13   : > { %p1815_p9 = scmp.eq.s32.totalorder %s2197_s17, 0  ;;  %p2225_p10 = pnand %p1592_p7, %p365_p8 }
  0x14   : > { %2508 = sst [smem:[#allocation20_spill]] %s2507_s24  ;;  %s2086_s26 = smov [#allocation6]  }
  0x15   : > { %p1798_p11 = pneg %p2225_p10  ;;  %s393_s27 = sshll.u32 %s2086_s26, 4  ;;  %s394_s27 = int_to_ptr.vmem [resolvable:$true] %s393_s27 }
  0x16   : > { %s2087_s18 = smov [#allocation3]   ;;  %s2088_s21 = smov [#allocation8]  }
  0x17   : > { %p2233_p12 = pnand %p1815_p9, %p1798_p11  ;;  %s380_s20 = sshll.u32 %s2087_s18, 4  ;;  %s381_s20 = int_to_ptr.vmem [resolvable:$true] %s380_s20 }
  0x18   : > { %s406_s22 = sshll.u32 %s2088_s21, 4  ;;  %s1919_s15 = scalar_lea.vmem %s394_s27, 256  ;;  %s407_s22 = int_to_ptr.vmem [resolvable:$true] %s406_s22 }
  0x19   : > { %p1910_p13 = pneg %p2233_p12  ;;  %p1920_p0 = scmp.ne.s32.totalorder %s394_s27, %s1919_s15 }
  0x1a   : > { %p1927_p3 = scmp.lt.s32.totalorder %s394_s27, %s394_s27  ;;  %p1928_p4 = scmp.lt.s32.totalorder %s1919_s15, %s1919_s15 }
  0x1b   : > { %p1922_p1 = pnand %p1920_p0, %p1910_p13 }
  0x1c   : > { %p1929_p7 = por %p1928_p4, %p1927_p3 }
  0x1d   : > { %p1923_p2 = pneg %p1922_p1 }
  0x1f   : > { %p1930_p8 = pnand %p1929_p7, %p1923_p2 }
  0x21   : > { %1933 = shalt.err (!%p1930_p8)
}
  0x22   : > { %s2089_s26 = smov 64   ;;  %s2090_s18 = smov 4  }
  0x23   : > { %1804 = dma.hbm_to_vmem [thread:$0]  (!%p2233_p12), %s2485_s4, 256, %s394_s27, [#allocation7], %s2089_s26, %s2089_s26, %s2090_s18  }
  0x24   : > { %s1945_s24 = scalar_lea.vmem %s381_s20, 256  ;;  %p1953_p2 = scmp.lt.s32.totalorder %s381_s20, %s381_s20 }
  0x25   : > { %p1946_p11 = scmp.ne.s32.totalorder %s381_s20, %s1945_s24  ;;  %p1954_p3 = scmp.lt.s32.totalorder %s1945_s24, %s1945_s24 }
  0x27   : > { %p1948_p0 = pnand %p1946_p11, %p1910_p13  ;;  %p1955_p4 = por %p1954_p3, %p1953_p2 }
  0x29   : > { %p1949_p1 = pneg %p1948_p0 }
  0x2b   : > { %p1956_p7 = pnand %p1955_p4, %p1949_p1 }
  0x2d   : > { %1959 = shalt.err (!%p1956_p7)
}
  0x2e   : > { %1801 = dma.hbm_to_vmem [thread:$0]  (!%p2233_p12), %s2484_s3, 256, %s381_s20, [#allocation4], %s2089_s26, %s2089_s26, %s2090_s18  }
  0x2f   : > { %s1971_s19 = scalar_lea.vmem %s407_s22, 256  ;;  %p1979_p2 = scmp.lt.s32.totalorder %s407_s22, %s407_s22 }
  0x30   : > { %p1972_p8 = scmp.ne.s32.totalorder %s407_s22, %s1971_s19  ;;  %p1980_p1 = scmp.lt.s32.totalorder %s1971_s19, %s1971_s19 }
  0x32   : > { %p1974_p11 = pnand %p1972_p8, %p1910_p13  ;;  %p1981_p3 = por %p1980_p1, %p1979_p2 }
  0x34   : > { %p1975_p0 = pneg %p1974_p11 }
  0x36   : > { %p1982_p4 = pnand %p1981_p3, %p1975_p0 }
  0x38   : > { %1985 = shalt.err (!%p1982_p4)
}
  0x39   : > { %1807 = dma.hbm_to_vmem [thread:$0]  (!%p2233_p12), %s2486_s5, 256, %s407_s22, [#allocation7], %s2089_s26, %s2089_s26, %s2090_s18  }
  0x3a   : > { %s2091_s27 = smov [#allocation9]  }
  0x3b   : > { %s419_s20 = sshll.u32 %s2091_s27, 4  ;;  %s420_s20 = int_to_ptr.vmem [resolvable:$true] %s419_s20 }
  0x3c   : > { %s1997_s21 = scalar_lea.vmem %s420_s20, 256  ;;  %p2005_p0 = scmp.lt.s32.totalorder %s420_s20, %s420_s20 }
  0x3d   : > { %p1998_p7 = scmp.ne.s32.totalorder %s420_s20, %s1997_s21  ;;  %p2006_p2 = scmp.lt.s32.totalorder %s1997_s21, %s1997_s21 }
  0x3f   : > { %p2000_p8 = pnand %p1998_p7, %p1910_p13  ;;  %p2007_p1 = por %p2006_p2, %p2005_p0 }
  0x41   : > { %p2001_p11 = pneg %p2000_p8 }
  0x43   : > { %p2008_p3 = pnand %p2007_p1, %p2001_p11 }
  0x45   : > { %2011 = shalt.err (!%p2008_p3)
}
  0x46   : > { %1810 = dma.hbm_to_vmem [thread:$0]  (!%p2233_p12), %s2487_s6, 256, %s420_s20, [#allocation10], %s2089_s26, %s2089_s26, %s2090_s18  }
  0x47   : > { %470 = sbr.rel (%p2225_p10) target bundleno = 2358 (0x936), region = 76 }
  0x4c   : > { %2055 = dma.done.wait (%p1815_p9), [#allocation4], 256  }
  0x4d   : > { %2057 = vsyncadd (%p1815_p9), [#allocation4], 4294967040 }
  0x4e   : > { %2059 = dma.done.wait (%p1815_p9), [#allocation7], 512  }
  0x4f   : > { %2061 = vsyncadd (%p1815_p9), [#allocation7], 4294966784 }
  0x50   : > { %2063 = dma.done.wait (%p1815_p9), [#allocation10], 256  }
  0x51   : > { %2065 = vsyncadd (%p1815_p9), [#allocation10], 4294967040  ;;  %p531_p10 = scmp.lt.s32.totalorder %s2197_s17, 1  ;;  %v2092_v0 = vmov 0.0   ;;  %vm2093_vm0 = vmmov 0   ;;  %v1870_v1 = vld [vmem:[#allocation3 + $0x8] sm:$0xff]  }
  0x52   : > { %1688 = vmatprep.subr.bf16.mxu1 %v2092_v0  ;;  %1680 = vmatprep.subr.bf16.mxu0 %v2092_v0  ;;  %v1871_v2 = vld [vmem:[%s2483_s2 + $0x8] sm:$0xff]   ;;  %s2511_s0 = sld [smem:[#allocation21_spill]]  ;;  %v1873_v4 = vld [vmem:[%s2483_s2] sm:$0xff]   ;;  %vm558_vm1 = vcmask 261120   ;;  %vm717_vm2 = vcmask 64512   ;;  %s2094_s21 = smov 112  }
  0x53   : > { %1692 = vmatprep.mubr.msk.bf16.mxu1 %vm2093_vm0, %v2092_v0  ;;  %s2303_s25 = scalar_select %p531_p10, %s2197_s17, 1  ;;  %1684 = vmatprep.mubr.msk.bf16.mxu0 %vm2093_vm0, %v2092_v0  ;;  %v1872_v3 = vld [vmem:[#allocation3] sm:$0xff]   ;;  %v1874_v18 = vld [vmem:[#allocation6 + $0x8] sm:$0xff]   ;;  %v1875_v19 = vld [vmem:[#allocation6] sm:$0xff]   ;;  %vm778_vm3 = vcmask 1043456   ;;  %vm942_vm4 = vcmask 130112  }
  0x54   : > { %1689 = vmatpush3.bf16.msra.mxu1 %v1870_v1  ;;  %1681 = vmatpush3.bf16.msra.mxu0 %v1871_v2  ;;  %s2095_s22 = smov 120   ;;  %s2096_s15 = smov 104   ;;  %vm1058_vm5 = vcmask 195712   ;;  %vm1174_vm6 = vcmask 261312   ;;  %vm1383_vm9 = vcmask 523264  }
  0x55   : > { %s1604_s28 = sshll.u32 %s2303_s25, 3  ;;  %1690 = vmatprep.subr.bf16.mxu1 %v2092_v0  ;;  %1682 = vmatprep.subr.bf16.mxu0 %v2092_v0  ;;  %s2097_s25 = smov 8  }
  0x56   : > { %s538_s19 = scalar_lea.vmem %s2482_s1, %s1604_s28  ;;  %s2099_s29 = smov 24  }
  0x57   : > { %v714_v29 = vld [vmem:[%s538_s19] sm:$0xff]  ;;  %s2100_s18 = smov [#allocation11]  }
  0x58   : > { %s534_s24 = scalar_lea.vmem %s2511_s0, %s1604_s28  ;;  %1691 = vmatpush3.bf16.msra.mxu1 %v1872_v3  ;;  %1683 = vmatpush3.bf16.msra.mxu0 %v1873_v4  ;;  %s2098_s28 = smov 16  }
  0x59   : > { %v2321_v5 = vld [vmem:[%s534_s24] sm:$0xff]  ;;  %1704 = vmatprep.subr.bf16.mxu1 %v2092_v0  ;;  %1696 = vmatprep.subr.bf16.mxu0 %v2092_v0  ;;  %s2016_s19 = sshll.u32 %s2100_s18, 4  ;;  %s2017_s19 = int_to_ptr.vmem [resolvable:$false] %s2016_s19 }
  0x5a   : > { %v541_v6 = vpack.c.bf16 %v2321_v5, %v2321_v5 }
  0x5c   : > { %1693 = vmatmul.mubr.msk.bf16.vlgmr.msra.gmra.mxu1 %vm558_vm1, %v541_v6  ;;  %1685 = vmatmul.mubr.msk.bf16.vlgmr.msra.gmra.mxu0 %vm558_vm1, %v541_v6 }
  0x5d   : > { %1706 = vmatprep.mubr.msk.bf16.mxu1 %vm2093_vm0, %v2092_v0  ;;  %1700 = vmatprep.mubr.msk.bf16.mxu0 %vm2093_vm0, %v2092_v0 }
  0x5e   : > { %1697 = vmatpush3.bf16.msra.mxu0 %v1874_v18 }
  0x5f   : > { %1698 = vmatprep.subr.bf16.mxu0 %v2092_v0 }
  0x62   : > { %1699 = vmatpush3.bf16.msra.mxu0 %v1875_v19 }
  0x63   : > { %1710 = vmatprep.subr.bf16.mxu0 %v2092_v0 }
  0x65   : > { %1701 = vmatmul.mubr.msk.bf16.vlgmr.msra.gmra.mxu0 %vm558_vm1, %v541_v6 }
  0x66   : > { %1712 = vmatprep.mubr.msk.bf16.mxu0 %vm2093_vm0, %v2092_v0 }
 0x11c   : > { %v652_v7 = vpop.f32.mrf.mxu1  ;;  %v596_v9 = vpop.f32.mrf.mxu0 }
 0x11d   : > { %v716_v8 = vpack.c.bf16 %v652_v7, %v652_v7  ;;  %v715_v11 = vpack.c.bf16 %v596_v9, %v596_v9 }
 0x11e   : > { %v1694_v10 = vpop.f32.mrf.mxu1  ;;  %v1686_v12 = vpop.f32.mrf.mxu0 }
 0x11f   : > { %946 = vrot.lane.b32.xlu1 %v716_v8, %s2094_s21  ;;  %829 = vrot.lane.b32.xlu0 %v716_v8, %s2095_s22  ;;  %v722_v13 = vsel %vm717_vm2, %v716_v8, 0 }
 0x120   : > { %v655_v14 = vpop.f32.mrf.mxu1  ;;  %1705 = vmatpush3.bf16.xpose.msra.mxu1 %v722_v13  ;;  %v599_v15 = vpop.f32.mrf.mxu0 }
 0x121   : > { %1716 = vmatprep.subr.bf16.mxu1 %v2092_v0 }
 0x122   : > { %v1695_v16 = vpop.f32.mrf.mxu1  ;;  %v1687_v17 = vpop.f32.mrf.mxu0 }
 0x123   : > { %944 = vrot.lane.b32.xlu1 %v715_v11, %s2094_s21  ;;  %826 = vrot.lane.b32.xlu0 %v715_v11, %s2095_s22 }
 0x125   : > { %v708_v36 = vpop.f32.mrf.mxu0 }
 0x126   : > { %v774_v37 = vpack.c.bf16 %v708_v36, %v708_v36 }
 0x127   : > { %1060 = vrot.lane.b32.xlu1 %v715_v11, %s2096_s15  ;;  %1062 = vrot.lane.b32.xlu0 %v716_v8, %s2096_s15  ;;  %v1702_v38 = vpop.f32.mrf.mxu0 }
 0x128   : > { %1707 = vmatmul.mubr.msk.bf16.vlgmr.msra.gmra.mxu1 %vm717_vm2, %v715_v11  ;;  %v780_v39 = vsel %vm778_vm3, %v774_v37, 0 }
 0x129   : > { %1718 = vmatprep.mubr.msk.bf16.mxu1 %vm2093_vm0, %v2092_v0  ;;  %v711_v40 = vpop.f32.mrf.mxu0  ;;  %1711 = vmatpush3.bf16.msra.mxu0 %v780_v39 }
 0x12a   : > { %1722 = vmatprep.subr.bf16.mxu0 %v2092_v0 }
 0x12b   : > { %v1703_v41 = vpop.f32.mrf.mxu0 }
 0x191   : > { %v830_v20 = vpop.permute.xlu0 %829  ;;  %v947_v22 = vpop.permute.xlu1 %946 }
 0x192   : > { %v835_v21 = vsel %vm717_vm2, %v830_v20, 0  ;;  %v952_v24 = vsel %vm717_vm2, %v947_v22, 0 }
 0x193   : > { %1717 = vmatpush3.bf16.xpose.msra.mxu1 %v835_v21 }
 0x194   : > { %1728 = vmatprep.subr.bf16.mxu1 %v2092_v0 }
 0x195   : > { %v827_v23 = vpop.permute.xlu0 %826  ;;  %v945_v26 = vpop.permute.xlu1 %944 }
 0x199   : > { %v1063_v25 = vpop.permute.xlu0 %1062  ;;  %v1061_v28 = vpop.permute.xlu1 %1060 }
 0x19a   : > { %1719 = vmatmul.mubr.msk.bf16.vlgmr.msra.gmra.mxu1 %vm717_vm2, %v827_v23  ;;  %v1068_v27 = vsel %vm717_vm2, %v1063_v25, 0 }
 0x19b   : > { %1729 = vmatpush3.bf16.xpose.msra.mxu1 %v952_v24  ;;  %1730 = vmatprep.mubr.msk.bf16.mxu1 %vm2093_vm0, %v2092_v0 }
 0x19c   : > { %1740 = vmatprep.subr.bf16.mxu1 %v2092_v0 }
 0x1a2   : > { %1731 = vmatmul.mubr.msk.bf16.vlgmr.msra.gmra.mxu1 %vm717_vm2, %v945_v26 }
 0x1a3   : > { %1741 = vmatpush3.bf16.xpose.msra.mxu1 %v1068_v27  ;;  %1742 = vmatprep.mubr.msk.bf16.mxu1 %vm2093_vm0, %v2092_v0 }
 0x1a4   : > { %1752 = vmatprep.subr.bf16.mxu1 %v2092_v0 }
 0x1aa   : > { %1743 = vmatmul.mubr.msk.bf16.vlgmr.msra.gmra.mxu1 %vm717_vm2, %v1061_v28 }
 0x1ab   : > { %1756 = vmatprep.mubr.msk.bf16.mxu1 %vm2093_vm0, %v2092_v0 }
 0x1e8   : > { %v758_v30 = vpop.f32.mrf.mxu1 }
 0x1e9   : > { %v759_v31 = vadd.f32 %v758_v30, %v714_v29 }
 0x1ea   : > { %v1708_v32 = vpop.f32.mrf.mxu1 }
 0x1eb   : > { %v764_v33 = vsel %vm717_vm2, %v759_v31, -inf }
 0x1ec   : > { %765 = vmax.xlane.f32.xlu0 %v764_v33  ;;  %v761_v34 = vpop.f32.mrf.mxu1 }
 0x1ee   : > { %v1709_v35 = vpop.f32.mrf.mxu1 }
 0x25a   : > { %v871_v42 = vpop.f32.mrf.mxu1 }
 0x25b   : > { %v872_v43 = vadd.f32 %v871_v42, %v714_v29 }
 0x25c   : > { %v1720_v44 = vpop.f32.mrf.mxu1 }
 0x25d   : > { %v877_v45 = vsel %vm717_vm2, %v872_v43, -inf  ;;  %v1876_v44 = vld [vmem:[#allocation8 + $0x8] sm:$0xff]  }
 0x25e   : > { %878 = vmax.xlane.f32.xlu1 %v877_v45  ;;  %v874_v46 = vpop.f32.mrf.mxu1  ;;  %1753 = vmatpush3.bf16.msra.mxu1 %v1876_v44 }
 0x25f   : > { %1754 = vmatprep.subr.bf16.mxu1 %v2092_v0 }
 0x260   : > { %v1721_v47 = vpop.f32.mrf.mxu1 }
 0x261   : > { %v1877_v47 = vld [vmem:[#allocation8] sm:$0xff]  }
 0x262   : > { %v988_v48 = vpop.f32.mrf.mxu1  ;;  %1755 = vmatpush3.bf16.msra.mxu1 %v1877_v47 }
 0x263   : > { %v989_v49 = vadd.f32 %v988_v48, %v714_v29  ;;  %1768 = vmatprep.subr.bf16.mxu1 %v2092_v0 }
 0x264   : > { %v1732_v50 = vpop.f32.mrf.mxu1 }
 0x265   : > { %v994_v51 = vsel %vm717_vm2, %v989_v49, -inf }
 0x266   : > { %995 = vmax.xlane.f32.xlu0 %v994_v51  ;;  %v991_v52 = vpop.f32.mrf.mxu1 }
 0x268   : > { %v1733_v53 = vpop.f32.mrf.mxu1 }
 0x26a   : > { %v1104_v54 = vpop.f32.mrf.mxu1 }
 0x26b   : > { %v1105_v55 = vadd.f32 %v1104_v54, %v714_v29 }
 0x26c   : > { %v1744_v56 = vpop.f32.mrf.mxu1 }
 0x26d   : > { %v1110_v57 = vsel %vm717_vm2, %v1105_v55, -inf }
 0x26e   : > { %1111 = vmax.xlane.f32.xlu0 %v1110_v57  ;;  %v1107_v58 = vpop.f32.mrf.mxu1 }
 0x26f   : > { %888 = vrot.lane.b32.xlu1 %v774_v37, %s2095_s22  ;;  %s528_s22 = sand.u32 1, %s2076_s30  }
 0x270   : > { %v1745_v59 = vpop.f32.mrf.mxu1  ;;  %s1466_s0 = scalar_lea.sflag [#allocation5], %s528_s22 }
 0x273   : > { %1120 = vrot.lane.b32.xlu1 %v774_v37, %s2096_s15  ;;  %s1603_s15 = sshll.u32 %s528_s22, 3 }
 0x275   : > { %v766_v60 = vpop.xlane.xlu0 %765 }
 0x276   : > { %v767_v61 = vsub.f32 %v759_v31, %v766_v60 }
 0x278   : > { %v768_v62 = vmul.f32 1.442695, %v767_v61 }
 0x27a   : > { %1884 = vpow2.f32 %v768_v62 }
 0x284   : > { %1004 = vrot.lane.b32.xlu0 %v774_v37, %s2094_s21 }
 0x287   : > { %v1885_v63 = vpop.eup %1884 }
 0x288   : > { %v773_v1 = vpack.c.bf16 %v1885_v63, %v1885_v63  ;;  %v770_v19 = vsel %vm717_vm2, %v1885_v63, 0.0 }
 0x28a   : > { %1713 = vmatmul.mubr.msk.bf16.vlgmr.msra.gmra.mxu0 %vm717_vm2, %v773_v1 }
 0x28b   : > { %1724 = vmatprep.mubr.msk.bf16.mxu0 %vm2093_vm0, %v2092_v0 }
 0x2e7   : > { %v879_v2 = vpop.xlane.xlu1 %878 }
 0x2e8   : > { %v880_v3 = vsub.f32 %v872_v43, %v879_v2 }
 0x2ea   : > { %v881_v4 = vmul.f32 1.442695, %v880_v3 }
 0x2eb   : > { %v889_v6 = vpop.permute.xlu1 %888 }
 0x2ec   : > { %1886 = vpow2.f32 %v881_v4  ;;  %v894_v7 = vsel %vm778_vm3, %v889_v6, 0 }
 0x2ed   : > { %1723 = vmatpush3.bf16.msra.mxu0 %v894_v7 }
 0x2ee   : > { %1734 = vmatprep.subr.bf16.mxu0 %v2092_v0 }
 0x2ef   : > { %v996_v8 = vpop.xlane.xlu0 %995  ;;  %v1121_v21 = vpop.permute.xlu1 %1120 }
 0x2f0   : > { %v997_v9 = vsub.f32 %v989_v49, %v996_v8  ;;  %v1126_v24 = vsel %vm778_vm3, %v1121_v21, 0 }
 0x2f2   : > { %v998_v10 = vmul.f32 1.442695, %v997_v9 }
 0x2f4   : > { %1888 = vpow2.f32 %v998_v10 }
 0x2f7   : > { %v1112_v11 = vpop.xlane.xlu0 %1111 }
 0x2f8   : > { %v1113_v12 = vsub.f32 %v1105_v55, %v1112_v11 }
 0x2f9   : > { %v1887_v13 = vpop.eup %1886 }
 0x2fa   : > { %v1114_v14 = vmul.f32 1.442695, %v1113_v12  ;;  %v883_v15 = vsel %vm717_vm2, %v1887_v13, 0.0  ;;  %v886_v16 = vpack.c.bf16 %v1887_v13, %v1887_v13  ;;  %v1878_v12 = vld [vmem:[#allocation9 + $0x8] sm:$0xff]   ;;  %v1879_v13 = vld [vmem:[#allocation9] sm:$0xff]  }
 0x2fb   : > { %v1005_v17 = vpop.permute.xlu0 %1004  ;;  %884 = vadd.xlane.f32.xlu1 %v883_v15 }
 0x2fc   : > { %1890 = vpow2.f32 %v1114_v14  ;;  %v1010_v18 = vsel %vm778_vm3, %v1005_v17, 0  ;;  %1725 = vmatmul.mubr.msk.bf16.vlgmr.msra.gmra.mxu0 %vm717_vm2, %v886_v16  ;;  %v1881_v14 = vld [vmem:[%s2489_s8 + $0x10] sm:$0xff]  }
 0x2fd   : > { %1735 = vmatpush3.bf16.msra.mxu0 %v1010_v18  ;;  %1736 = vmatprep.mubr.msk.bf16.mxu0 %vm2093_vm0, %v2092_v0 }
 0x2fe   : > { %1746 = vmatprep.subr.bf16.mxu0 %v2092_v0 }
 0x2ff   : > { %771 = vadd.xlane.f32.xlu1 %v770_v19 }
 0x301   : > { %v1889_v20 = vpop.eup %1888 }
 0x302   : > { %v1000_v22 = vsel %vm717_vm2, %v1889_v20, 0.0  ;;  %v1003_v23 = vpack.c.bf16 %v1889_v20, %v1889_v20 }
 0x303   : > { %1001 = vadd.xlane.f32.xlu0 %v1000_v22 }
 0x304   : > { %1737 = vmatmul.mubr.msk.bf16.vlgmr.msra.gmra.mxu0 %vm717_vm2, %v1003_v23 }
 0x305   : > { %1747 = vmatpush3.bf16.msra.mxu0 %v1126_v24  ;;  %1748 = vmatprep.mubr.msk.bf16.mxu0 %vm2093_vm0, %v2092_v0  ;;  %v1626_v24 = vld [vmem:[%s2491_s10] ss:$0 sm:$0xff] }
 0x306   : > { %1760 = vmatprep.subr.bf16.mxu0 %v2092_v0 }
 0x309   : > { %v1891_v25 = vpop.eup %1890 }
 0x30a   : > { %v1116_v26 = vsel %vm717_vm2, %v1891_v25, 0.0  ;;  %v1119_v27 = vpack.c.bf16 %v1891_v25, %v1891_v25 }
 0x30b   : > { %1117 = vadd.xlane.f32.xlu0 %v1116_v26  ;;  %v1627_v26 = vld [vmem:[%s2492_s11] ss:$0 sm:$0xff] }
 0x30c   : > { %1749 = vmatmul.mubr.msk.bf16.vlgmr.msra.gmra.mxu0 %vm717_vm2, %v1119_v27 }
 0x30d   : > { %1764 = vmatprep.mubr.msk.bf16.mxu0 %vm2093_vm0, %v2092_v0  ;;  %1761 = vmatpush3.bf16.msra.mxu0 %v1878_v12 }
 0x30e   : > { %1762 = vmatprep.subr.bf16.mxu0 %v2092_v0 }
 0x311   : > { %1763 = vmatpush3.bf16.msra.mxu0 %v1879_v13 }
 0x34a   : > { %v816_v28 = vpop.f32.mrf.mxu0 }
 0x34c   : > { %v1714_v29 = vpop.f32.mrf.mxu0 }
 0x34e   : > { %v819_v30 = vpop.f32.mrf.mxu0 }
 0x34f   : > { %v1882_v30 = vld [vmem:[%s2489_s8 + $0x8] sm:$0xff]  }
 0x350   : > { %v1715_v31 = vpop.f32.mrf.mxu0 }
 0x351   : > { %v1883_v31 = vld [vmem:[%s2489_s8] sm:$0xff]  }
 0x384   : > { %v885_v32 = vpop.xlane.xlu1 %884 }
 0x388   : > { %v772_v33 = vpop.xlane.xlu1 %771 }
 0x389   : > { %1892 = vrcp.f32 %v772_v33 }
 0x38a   : > { %1894 = vrcp.f32 %v885_v32  ;;  %v1628_v32 = vld [vmem:[%s2488_s7] ss:$0 sm:$0xff] }
 0x38c   : > { %v1002_v36 = vpop.xlane.xlu0 %1001 }
 0x38d   : > { %1896 = vrcp.f32 %v1002_v36 }
 0x394   : > { %v1118_v38 = vpop.xlane.xlu0 %1117 }
 0x395   : > { %1898 = vrcp.f32 %v1118_v38 }
 0x396   : > { %v1893_v34 = vpop.eup %1892 }
 0x397   : > { %v823_v35 = vmul.f32 %v1893_v34, %v816_v28  ;;  %v1895_v37 = vpop.eup %1894 }
 0x399   : > { %824 = vst.msk [vmem:[#allocation2] sm:$0xff] %vm717_vm2, %v823_v35 }
 0x39a   : > { %v1897_v45 = vpop.eup %1896 }
 0x3a2   : > { %v1899_v52 = vpop.eup %1898 }
 0x3bc   : > { %v930_v39 = vpop.f32.mrf.mxu0 }
 0x3bd   : > { %v937_v40 = vmul.f32 %v1895_v37, %v930_v39 }
 0x3be   : > { %v1726_v41 = vpop.f32.mrf.mxu0 }
 0x3bf   : > { %939 = vrot.lane.b32.xlu0 %v937_v40, %s2097_s25 }
 0x3c0   : > { %v933_v42 = vpop.f32.mrf.mxu0 }
 0x3c2   : > { %v1727_v43 = vpop.f32.mrf.mxu0 }
 0x3c4   : > { %v1046_v46 = vpop.f32.mrf.mxu0 }
 0x3c5   : > { %v1053_v48 = vmul.f32 %v1897_v45, %v1046_v46 }
 0x3c6   : > { %v1738_v49 = vpop.f32.mrf.mxu0 }
 0x3c7   : > { %1055 = vrot.lane.b32.xlu1 %v1053_v48, %s2098_s28  ;;  %s1641_s28 = sshll.u32 %s2197_s17, 7  ;;  %s2018_s17 = scalar_lea.vmem %s2017_s19, 256 }
 0x3c8   : > { %v1049_v50 = vpop.f32.mrf.mxu0  ;;  %s1477_s21 = scalar_lea.hbm %s2495_s14, %s1641_s28 }
 0x3ca   : > { %v1739_v51 = vpop.f32.mrf.mxu0 }
 0x3cc   : > { %v1162_v53 = vpop.f32.mrf.mxu0 }
 0x3cd   : > { %v1169_v54 = vmul.f32 %v1899_v52, %v1162_v53 }
 0x3ce   : > { %v1750_v55 = vpop.f32.mrf.mxu0 }
 0x3cf   : > { %1171 = vrot.lane.b32.xlu1 %v1169_v54, %s2099_s29  ;;  %s530_s29 = scalar_lea.vmem [#allocation11], %s1603_s15 }
 0x3d0   : > { %v1165_v56 = vpop.f32.mrf.mxu0  ;;  %s1479_s24 = sshll.u32 %s530_s29, 4  ;;  %s1480_s24 = int_to_ptr.vmem [resolvable:$true] %s1479_s24 }
 0x3d1   : > { %s2012_s26 = scalar_lea.vmem %s1480_s24, 128  ;;  %p2019_p4 = scmp.lt.s32.totalorder %s1480_s24, %s2017_s19 }
 0x3d2   : > { %v1751_v57 = vpop.f32.mrf.mxu0  ;;  %p2013_p9 = scmp.ne.s32.totalorder %s1480_s24, %s2012_s26  ;;  %p2020_p7 = scmp.lt.s32.totalorder %s2018_s17, %s2012_s26 }
 0x3d4   : > { %p2014_p12 = pnand %p2013_p9, %p2214_p5  ;;  %p2021_p8 = por %p2020_p7, %p2019_p4 }
 0x3d6   : > { %p2015_p13 = pneg %p2014_p12 }
 0x3d8   : > { %p2022_p11 = pnand %p2021_p8, %p2015_p13 }
 0x431   : > { %v940_v58 = vpop.permute.xlu0 %939 }
 0x432   : > { %943 = vst.msk [vmem:[#allocation2] sm:$0xff] %vm942_vm4, %v940_v58 }
 0x439   : > { %v1056_v59 = vpop.permute.xlu1 %1055 }
 0x43a   : > { %1059 = vst.msk [vmem:[#allocation2] sm:$0xff] %vm1058_vm5, %v1056_v59 }
 0x441   : > { %v1172_v60 = vpop.permute.xlu1 %1171 }
 0x442   : > { %1175 = vst.msk [vmem:[#allocation2] sm:$0xff] %vm1174_vm6, %v1172_v60 }
 0x449   : > { %v1176_v61 = vld [vmem:[#allocation2] sm:$0xff] }
 0x44a   : > { %v1177_v62 = vpack.c.bf16 %v1176_v61, %v1176_v61  ;;  %v1638_v61 = vld [vmem:[%s2493_s12] ss:$0 sm:$0xff] }
 0x44c   : > { %1757 = vmatmul.mubr.msk.bf16.vlgmr.msra.gmra.mxu1 %vm558_vm1, %v1177_v62 }
 0x44d   : > { %1776 = vmatprep.mubr.msk.bf16.mxu1 %vm2093_vm0, %v2092_v0 }
 0x50c   : > { %v1231_v63 = vpop.f32.mrf.mxu1 }
 0x50d   : > { %v1237_v1 = vadd.f32 %v1231_v63, %v2321_v5  ;;  %v1880_v5 = vld [vmem:[%s2489_s8 + $0x18] sm:$0xff]   ;;  %v1639_v63 = vld [vmem:[%s2494_s13] ss:$0 sm:$0xff] }
 0x50e   : > { %v1758_v2 = vpop.f32.mrf.mxu1  ;;  %1769 = vmatpush3.bf16.msra.mxu1 %v1880_v5 }
 0x50f   : > { %v1238_v3 = vsel %vm558_vm1, %v1237_v1, 0.0  ;;  %1770 = vmatprep.subr.bf16.mxu1 %v2092_v0 }
 0x510   : > { %1239 = vadd.xlane.f32.xlu0 %v1238_v3  ;;  %v1234_v4 = vpop.f32.mrf.mxu1 }
 0x512   : > { %v1759_v6 = vpop.f32.mrf.mxu1  ;;  %1771 = vmatpush3.bf16.msra.mxu1 %v1881_v14 }
 0x513   : > { %1772 = vmatprep.subr.bf16.mxu1 %v2092_v0 }
 0x516   : > { %1773 = vmatpush3.bf16.msra.mxu1 %v1882_v30 }
 0x517   : > { %1774 = vmatprep.subr.bf16.mxu1 %v2092_v0  ;;  %v1632_v0 = vld [vmem:[%s2490_s9] ss:$0 sm:$0xff] }
 0x51a   : > { %1775 = vmatpush3.bf16.msra.mxu1 %v1883_v31 }
 0x599   : > { %v1240_v7 = vpop.xlane.xlu0 %1239 }
 0x59a   : > { %v1242_v8 = vmul.f32 0.03125, %v1240_v7 }
 0x59c   : > { %v1243_v9 = vsub.f32 %v1237_v1, %v1242_v8 }
 0x59e   : > { %v1244_v10 = vmul.f32 %v1243_v9, %v1243_v9 }
 0x5a0   : > { %v1245_v11 = vsel %vm558_vm1, %v1244_v10, 0.0 }
 0x5a1   : > { %1246 = vadd.xlane.f32.xlu1 %v1245_v11 }
 0x62a   : > { %v1247_v15 = vpop.xlane.xlu1 %1246 }
 0x62b   : > { %v1248_v16 = vmul.f32 0.03125, %v1247_v15 }
 0x62d   : > { %1900 = vrsqrt.f32 %v1248_v16  ;;  %vm1251_vm7 = vcmp.eq.f32.partialorder %v1248_v16, inf  ;;  %v1254_v19 = vand.u32 2147483648, %v1248_v16  ;;  %vm1253_vm8 = vcmp.eq.f32.partialorder %v1248_v16, 0.0 }
 0x63a   : > { %v1901_v17 = vpop.eup %1900 }
 0x63b   : > { %v1250_v18 = vmul.f32 %v1901_v17, %v1248_v16 }
 0x63d   : > { %v1252_v20 = vsel %vm1251_vm7, %v1248_v16, %v1250_v18 }
 0x63e   : > { %v1255_v21 = vsel %vm1253_vm8, %v1254_v19, %v1252_v20 }
 0x63f   : > { %v1256_v22 = vadd.f32 1e-06, %v1255_v21 }
 0x641   : > { %1902 = vrcp.f32 %v1256_v22 }
 0x64e   : > { %v1903_v23 = vpop.eup %1902 }
 0x64f   : > { %v1258_v25 = vmul.f32 %v1903_v23, %v1243_v9 }
 0x651   : > { %v1266_v27 = vmul.f32 %v1626_v24, %v1258_v25 }
 0x653   : > { %v1274_v28 = vadd.f32 %v1627_v26, %v1266_v27 }
 0x655   : > { %v1275_v29 = vpack.c.bf16 %v1274_v28, %v1274_v28 }
 0x657   : > { %1765 = vmatmul.mubr.msk.bf16.vlgmr.msra.gmra.mxu0 %vm558_vm1, %v1275_v29 }
 0x717   : > { %v1336_v33 = vpop.f32.mrf.mxu0 }
 0x718   : > { %v1337_v34 = vadd.f32 %v1628_v32, %v1336_v33 }
 0x719   : > { %v1766_v35 = vpop.f32.mrf.mxu0 }
 0x71a   : > { %v1342_v36 = vmax.f32 %v1337_v34, 0.0 }
 0x71b   : > { %v1339_v37 = vpop.f32.mrf.mxu0 }
 0x71c   : > { %v1343_v38 = vpack.c.bf16 %v1342_v36, %v1342_v36 }
 0x71d   : > { %v1767_v39 = vpop.f32.mrf.mxu0 }
 0x71e   : > { %1777 = vmatmul.mubr.msk.bf16.vlgmr.msra.gmra.mxu1 %vm1383_vm9, %v1343_v38 }
 0x7de   : > { %v1421_v40 = vpop.f32.mrf.mxu1 }
 0x7df   : > { %v1422_v41 = vadd.f32 %v1632_v0, %v1421_v40 }
 0x7e0   : > { %v1778_v42 = vpop.f32.mrf.mxu1 }
 0x7e1   : > { %v1427_v43 = vadd.f32 %v1422_v41, %v1274_v28 }
 0x7e2   : > { %v1424_v44 = vpop.f32.mrf.mxu1 }
 0x7e3   : > { %v1428_v45 = vsel %vm558_vm1, %v1427_v43, 0.0 }
 0x7e4   : > { %1429 = vadd.xlane.f32.xlu0 %v1428_v45  ;;  %v1779_v46 = vpop.f32.mrf.mxu1 }
 0x86d   : > { %v1430_v47 = vpop.xlane.xlu0 %1429 }
 0x86e   : > { %v1431_v48 = vmul.f32 0.03125, %v1430_v47 }
 0x870   : > { %v1432_v49 = vsub.f32 %v1427_v43, %v1431_v48 }
 0x872   : > { %v1433_v50 = vmul.f32 %v1432_v49, %v1432_v49 }
 0x874   : > { %v1434_v51 = vsel %vm558_vm1, %v1433_v50, 0.0 }
 0x875   : > { %1435 = vadd.xlane.f32.xlu0 %v1434_v51 }
 0x8fe   : > { %v1436_v52 = vpop.xlane.xlu0 %1435 }
 0x8ff   : > { %v1437_v53 = vmul.f32 0.03125, %v1436_v52 }
 0x901   : > { %1904 = vrsqrt.f32 %v1437_v53  ;;  %vm1440_vm10 = vcmp.eq.f32.partialorder %v1437_v53, inf  ;;  %v1443_v56 = vand.u32 2147483648, %v1437_v53  ;;  %vm1442_vm11 = vcmp.eq.f32.partialorder %v1437_v53, 0.0 }
 0x90e   : > { %v1905_v54 = vpop.eup %1904 }
 0x90f   : > { %v1439_v55 = vmul.f32 %v1905_v54, %v1437_v53 }
 0x911   : > { %v1441_v57 = vsel %vm1440_vm10, %v1437_v53, %v1439_v55 }
 0x912   : > { %v1444_v58 = vsel %vm1442_vm11, %v1443_v56, %v1441_v57 }
 0x913   : > { %v1445_v59 = vadd.f32 1e-06, %v1444_v58 }
 0x915   : > { %1906 = vrcp.f32 %v1445_v59 }
 0x922   : > { %v1907_v60 = vpop.eup %1906 }
 0x923   : > { %v1447_v62 = vmul.f32 %v1907_v60, %v1432_v49 }
 0x925   : > { %v1455_v1 = vmul.f32 %v1638_v61, %v1447_v62 }
 0x927   : > { %v1463_v2 = vadd.f32 %v1639_v63, %v1455_v1 }
 0x929   : > { %1464 = vst.msk [vmem:[%s530_s29] sm:$0xff] %vm558_vm1, %v1463_v2 }
 0x92a   : > { %2025 = shalt.err (!%p2022_p11)
}
 0x92b   : > { %s2026_s15 = scalar_lea.hbm %s1477_s21, 128  ;;  %s2030_s28 = scalar_lea.hbm %s2495_s14, 256 }
 0x92c   : > { %p2027_p0 = scmp.ne.s32.totalorder %s1477_s21, %s2026_s15  ;;  %p2031_p3 = scmp.lt.s32.totalorder %s1477_s21, %s2495_s14 }
 0x92d   : > { %p2032_p10 = scmp.lt.s32.totalorder %s2030_s28, %s2026_s15 }
 0x92e   : > { %p2028_p2 = pnand %p2027_p0, %p2214_p5 }
 0x92f   : > { %p2033_p9 = por %p2032_p10, %p2031_p3 }
 0x930   : > { %p2029_p1 = pneg %p2028_p2 }
 0x932   : > { %p2034_p12 = pnand %p2033_p9, %p2029_p1 }
 0x934   : > { %2037 = shalt.err (!%p2034_p12)
}
 0x935   : > { %1796 = dma.vmem_to_hbm [thread:$0]  (%p2214_p5), %s1480_s24, 128, %s1477_s21, %s1466_s0  }
 0x936 PF: > { %s2512_s20 = sld [smem:[#allocation16_spill]]  ;;  %p1823_p13 = scmp.ge.s32.totalorder %s2084_s16, 2 }
 0x938   : > { %p1812_p4 = pnand %p1823_p13, %p2218_p6 }
 0x93a   : > { %p1813_p7 = pneg %p1812_p4 }
 0x93c   : > { %s1491_s18 = sand.u32 1, %s2512_s20  }
 0x93d   : > { %s1492_s19 = scalar_lea.sflag [#allocation5], %s1491_s18 }
 0x93e   : > { %2067 = dma.done.wait (%p1813_p7), %s1492_s19, 128  }
 0x93f   : > { %2069 = vsyncadd (%p1813_p7), %s1492_s19, 4294967168  ;;  %s2514_s16 = sld [smem:[#allocation18_spill]]  ;;  %s2517_s29 = smov %s2076_s30 }
 0x940   : > { %s2515_s17 = sld [smem:[#allocation17_spill]] }
 0x941   : > { %s2516_s15 = sld [smem:[#allocation19_spill]] }
 0x945   : > { %p27_p8 = scmp.ge.s32.totalorder %s2514_s16, 4  }
 0x946   : > { %s2518_s30 = smov %s2515_s17 }
 0x947   :  { %29 = sbr.rel (!%p27_p8) target bundleno = 8 (0x8), region = 131 }
 0x94c   :  { %1497 = vsyncpa [#allocation4], 1 }
 0x94d   :  { %1499 = vsyncpa [#allocation4 + $0x1], 1 }
 0x94e   :  { %1500 = vsyncpa [#allocation7], 1 }
 0x94f   :  { %1501 = vsyncpa [#allocation10], 1 }
 0x950   :  { %1502 = vsyncpa [#allocation5], 1 }
 0x951   :  { %1504 = vsyncpa [#allocation5 + $0x1], 1 }

</bundles_post_ra>
